<compile_context>
chip_gen: v7x
topology: tpu7x:2x2x1
jax: 0.10.0
libtpu: 0.0.40
codegen_flags: <defaults>
</compile_context>

<pallas_src>
import jax
import jax.numpy as jnp
from jax.experimental import pallas as pl
from jax.experimental.pallas import tpu as pltpu

_LANE = 128
_SUBLANE = 8

_ACT = {
    "relu": lambda h: jnp.maximum(h, 0.0),
    "sigd": jax.nn.sigmoid,
    "tanh": jnp.tanh,
    "arctan": jnp.arctan,
}


def _round_up(n, m):
    return ((n + m - 1) // m) * m


def _make_mlp_kernel(num_hidden, nonlinearity):
    """Build a fused MLP kernel for a fixed (static) number of hidden layers."""
    act = _ACT[nonlinearity]

    def kernel(x_ref, *refs):
        # refs = (w0, b0, w1, b1, ..., w_last, b_last, o_ref)
        o_ref = refs[-1]
        wb = refs[:-1]
        h = x_ref[...]  # (tm, K0_pad) f32
        for l in range(num_hidden):
            w_ref, b_ref = wb[2 * l], wb[2 * l + 1]
            h = jnp.dot(h, w_ref[...], preferred_element_type=jnp.float32)
            h = act(h + b_ref[...])          # bias + nonlinearity fused in epilogue
        w_ref, b_ref = wb[2 * num_hidden], wb[2 * num_hidden + 1]
        y = jnp.dot(h, w_ref[...], preferred_element_type=jnp.float32) + b_ref[...]
        o_ref[...] = y.astype(o_ref.dtype)

    return kernel


def mlp_forward(x, weights, biases, nonlinearity="relu", block_m=256):
    """Forward pass of MLP.

    x:       (N, ...) input; flattened to (N, in_dim) like PyTorch x.view(N, -1)
    weights: list of PyTorch-layout weights, W_l with shape (out_l, in_l)
    biases:  list of biases, b_l with shape (out_l,)
    """
    n = x.shape[0]
    x2d = jnp.reshape(x, (n, -1)).astype(jnp.float32)
    dims = [x2d.shape[1]] + [int(w.shape[0]) for w in weights]
    dims_p = [_round_up(d, _LANE) for d in dims]

    # M tile: 256 for real batches (MXU/lane friendly on all gens, fits VMEM on
    # v7x's smaller budget); shrink to a sublane-aligned tile for tiny batches.
    tm = block_m if n >= block_m else _round_up(n, _SUBLANE)
    m_pad = _round_up(n, tm)

    # Pad input (zeros in padded rows/cols are exact — see header comment).
    x_p = jnp.zeros((m_pad, dims_p[0]), jnp.float32).at[:n, : dims[0]].set(x2d)

    operands = [x_p]
    in_specs = [pl.BlockSpec((tm, dims_p[0]), lambda i: (i, 0))]
    for l, (w, b) in enumerate(zip(weights, biases)):
        kin, kout = dims[l], dims[l + 1]
        kin_p, kout_p = dims_p[l], dims_p[l + 1]
        # PyTorch Linear computes x @ W.T + b: pre-transpose to (in, out).
        w_t = (
            jnp.zeros((kin_p, kout_p), jnp.float32)
            .at[:kin, :kout]
            .set(jnp.asarray(w, jnp.float32).T)
        )
        b_p = (
            jnp.zeros((1, kout_p), jnp.float32)
            .at[0, :kout]
            .set(jnp.asarray(b, jnp.float32))
        )
        operands += [w_t, b_p]
        # Full-extent blocks with a constant index -> weights stay resident in
        # VMEM across the whole batch-tile grid (no re-DMA per step).
        in_specs += [
            pl.BlockSpec((kin_p, kout_p), lambda i: (0, 0)),
            pl.BlockSpec((1, kout_p), lambda i: (0, 0)),
        ]

    out_pad = dims_p[-1]
    kernel = _make_mlp_kernel(len(weights) - 1, nonlinearity)

    out_p = pl.pallas_call(
        kernel,
        out_shape=jax.ShapeDtypeStruct((m_pad, out_pad), jnp.float32),
        grid_spec=pltpu.PrefetchScalarGridSpec(
            num_scalar_prefetch=0,
            grid=(m_pad // tm,),
            in_specs=in_specs,
            out_specs=pl.BlockSpec((tm, out_pad), lambda i: (i, 0)),
        ),
        compiler_params=pltpu.CompilerParams(
            # Batch tiles are independent -> shard across TensorCores on v7x.
            dimension_semantics=("parallel",),
        ),
    )(*operands)

    return out_p[:n, : dims[-1]]


def _mlp_reference(x, weights, biases, nonlinearity):
    h = jnp.reshape(x, (x.shape[0], -1)).astype(jnp.float32)
    for w, b in zip(weights[:-1], biases[:-1]):
        h = _ACT[nonlinearity](h @ jnp.asarray(w, jnp.float32).T + jnp.asarray(b, jnp.float32))
    return h @ jnp.asarray(weights[-1], jnp.float32).T + jnp.asarray(biases[-1], jnp.float32)


if __name__ == "__main__":
    key = jax.random.PRNGKey(0)

    # MLP(in_dim=784, hidden_dims=[256, 128], out_dim=10, nonlinearity='relu')
    # Input given NCHW-style and flattened by forward(): (2, 4, 14, 14) -> 784.
    batch, in_dim, hidden_dims, out_dim = 2, 784, [256, 128], 10
    nonlinearity = "relu"
    neurons = [in_dim] + hidden_dims + [out_dim]

    keys = jax.random.split(key, 2 * len(neurons))
    weights, biases = [], []
    for li, (fan_in, fan_out) in enumerate(zip(neurons[:-1], neurons[1:])):
        scale = 1.0 / jnp.sqrt(jnp.float32(fan_in))
        weights.append(
            jax.random.uniform(keys[2 * li], (fan_out, fan_in), jnp.float32, -scale, scale)
        )
        biases.append(
            jax.random.uniform(keys[2 * li + 1], (fan_out,), jnp.float32, -scale, scale)
        )

    x = jax.random.normal(keys[-1], (batch, 4, 14, 14), dtype=jnp.float32)

    y = mlp_forward(x, weights, biases, nonlinearity=nonlinearity)
    jax.block_until_ready(y)

    y_ref = _mlp_reference(x, weights, biases, nonlinearity)
    assert y.shape == (batch, out_dim), y.shape
    assert bool(jnp.allclose(y, y_ref, atol=1e-3, rtol=1e-3)), (
        float(jnp.max(jnp.abs(y - y_ref)))
    )

    print("KERNEL_OK")
</pallas_src>

<mosaic_0001>
module attributes {stable_mosaic.version = 11 : i64} {
  func.func @kernel(%arg0: i32, %arg1: memref<8x896xf32, #tpu.memory_space<vmem>>, %arg2: memref<896x256xf32, #tpu.memory_space<vmem>>, %arg3: memref<1x256xf32, #tpu.memory_space<vmem>>, %arg4: memref<256x128xf32, #tpu.memory_space<vmem>>, %arg5: memref<1x128xf32, #tpu.memory_space<vmem>>, %arg6: memref<128x128xf32, #tpu.memory_space<vmem>>, %arg7: memref<1x128xf32, #tpu.memory_space<vmem>>, %arg8: memref<8x128xf32, #tpu.memory_space<vmem>>) attributes {dimension_semantics = [#tpu.dimension_semantics<parallel>], iteration_bounds = array<i64: 1>, scalar_prefetch = 0 : i64, scratch_operands = 0 : i64, tpu.core_type = #tpu.core_type<tc>, window_params = [{transform_indices = @transform_0, window_bounds = array<i64: 8, 896>}, {pipeline_mode = #tpu.pipeline_mode<synchronous>, transform_indices = @transform_1, window_bounds = array<i64: 896, 256>}, {pipeline_mode = #tpu.pipeline_mode<synchronous>, transform_indices = @transform_2, window_bounds = array<i64: 1, 256>}, {pipeline_mode = #tpu.pipeline_mode<synchronous>, transform_indices = @transform_3, window_bounds = array<i64: 256, 128>}, {pipeline_mode = #tpu.pipeline_mode<synchronous>, transform_indices = @transform_4, window_bounds = array<i64: 1, 128>}, {pipeline_mode = #tpu.pipeline_mode<synchronous>, transform_indices = @transform_5, window_bounds = array<i64: 128, 128>}, {pipeline_mode = #tpu.pipeline_mode<synchronous>, transform_indices = @transform_6, window_bounds = array<i64: 1, 128>}, {transform_indices = @transform_7, window_bounds = array<i64: 8, 128>}]} {
    %c0 = arith.constant 0 : index
    %c0_0 = arith.constant 0 : index
    %0 = vector.load %arg1[%c0, %c0_0] : memref<8x896xf32, #tpu.memory_space<vmem>>, vector<8x896xf32>
    %c0_1 = arith.constant 0 : index
    %c0_2 = arith.constant 0 : index
    %1 = vector.load %arg2[%c0_1, %c0_2] : memref<896x256xf32, #tpu.memory_space<vmem>>, vector<896x256xf32>
    %cst = arith.constant dense<0.000000e+00> : vector<8x256xf32>
    %2 = tpu.matmul %0, %1, %cst {dimension_numbers = #tpu.dot_dimension_numbers<[1], [0], [0], [1], [0, 0, 1, 1], [], []>} : vector<8x896xf32>, vector<896x256xf32>, vector<8x256xf32> -> vector<8x256xf32>
    %c0_3 = arith.constant 0 : index
    %c0_4 = arith.constant 0 : index
    %3 = vector.load %arg3[%c0_3, %c0_4] : memref<1x256xf32, #tpu.memory_space<vmem>>, vector<1x256xf32>
    %4 = vector.broadcast %3 : vector<1x256xf32> to vector<8x256xf32>
    %5 = arith.addf %2, %4 : vector<8x256xf32>
    %cst_5 = arith.constant 0.000000e+00 : f32
    %6 = vector.broadcast %cst_5 : f32 to vector<8x256xf32>
    %7 = arith.maximumf %5, %6 : vector<8x256xf32>
    %c0_6 = arith.constant 0 : index
    %c0_7 = arith.constant 0 : index
    %8 = vector.load %arg4[%c0_6, %c0_7] : memref<256x128xf32, #tpu.memory_space<vmem>>, vector<256x128xf32>
    %cst_8 = arith.constant dense<0.000000e+00> : vector<8x128xf32>
    %9 = tpu.matmul %7, %8, %cst_8 {dimension_numbers = #tpu.dot_dimension_numbers<[1], [0], [0], [1], [0, 0, 1, 1], [], []>} : vector<8x256xf32>, vector<256x128xf32>, vector<8x128xf32> -> vector<8x128xf32>
    %c0_9 = arith.constant 0 : index
    %c0_10 = arith.constant 0 : index
    %10 = vector.load %arg5[%c0_9, %c0_10] : memref<1x128xf32, #tpu.memory_space<vmem>>, vector<1x128xf32>
    %11 = vector.broadcast %10 : vector<1x128xf32> to vector<8x128xf32>
    %12 = arith.addf %9, %11 : vector<8x128xf32>
    %cst_11 = arith.constant 0.000000e+00 : f32
    %13 = vector.broadcast %cst_11 : f32 to vector<8x128xf32>
    %14 = arith.maximumf %12, %13 : vector<8x128xf32>
    %c0_12 = arith.constant 0 : index
    %c0_13 = arith.constant 0 : index
    %15 = vector.load %arg6[%c0_12, %c0_13] : memref<128x128xf32, #tpu.memory_space<vmem>>, vector<128x128xf32>
    %cst_14 = arith.constant dense<0.000000e+00> : vector<8x128xf32>
    %16 = tpu.matmul %14, %15, %cst_14 {dimension_numbers = #tpu.dot_dimension_numbers<[1], [0], [0], [1], [0, 0, 1, 1], [], []>} : vector<8x128xf32>, vector<128x128xf32>, vector<8x128xf32> -> vector<8x128xf32>
    %c0_15 = arith.constant 0 : index
    %c0_16 = arith.constant 0 : index
    %17 = vector.load %arg7[%c0_15, %c0_16] : memref<1x128xf32, #tpu.memory_space<vmem>>, vector<1x128xf32>
    %18 = vector.broadcast %17 : vector<1x128xf32> to vector<8x128xf32>
    %19 = arith.addf %16, %18 : vector<8x128xf32>
    %c0_17 = arith.constant 0 : index
    %c0_18 = arith.constant 0 : index
    %20 = vector.load %arg8[%c0_17, %c0_18] : memref<8x128xf32, #tpu.memory_space<vmem>>, vector<8x128xf32>
    tpu.vector_store %arg8[%c0_17, %c0_18], %19 {strides = array<i32>} : memref<8x128xf32, #tpu.memory_space<vmem>>, vector<8x128xf32>,
    return
  }
  func.func @transform_0(%arg0: i32) -> (i32, i32) {
    %c0_i32 = arith.constant 0 : i32
    %c0_i32_0 = arith.constant 0 : i32
    return %arg0, %c0_i32 : i32, i32
  }
  func.func @transform_1(%arg0: i32) -> (i32, i32) {
    %c0_i32 = arith.constant 0 : i32
    %c0_i32_0 = arith.constant 0 : i32
    %c0_i32_1 = arith.constant 0 : i32
    return %c0_i32, %c0_i32_0 : i32, i32
  }
  func.func @transform_2(%arg0: i32) -> (i32, i32) {
    %c0_i32 = arith.constant 0 : i32
    %c0_i32_0 = arith.constant 0 : i32
    %c0_i32_1 = arith.constant 0 : i32
    return %c0_i32, %c0_i32_0 : i32, i32
  }
  func.func @transform_3(%arg0: i32) -> (i32, i32) {
    %c0_i32 = arith.constant 0 : i32
    %c0_i32_0 = arith.constant 0 : i32
    %c0_i32_1 = arith.constant 0 : i32
    return %c0_i32, %c0_i32_0 : i32, i32
  }
  func.func @transform_4(%arg0: i32) -> (i32, i32) {
    %c0_i32 = arith.constant 0 : i32
    %c0_i32_0 = arith.constant 0 : i32
    %c0_i32_1 = arith.constant 0 : i32
    return %c0_i32, %c0_i32_0 : i32, i32
  }
  func.func @transform_5(%arg0: i32) -> (i32, i32) {
    %c0_i32 = arith.constant 0 : i32
    %c0_i32_0 = arith.constant 0 : i32
    %c0_i32_1 = arith.constant 0 : i32
    return %c0_i32, %c0_i32_0 : i32, i32
  }
  func.func @transform_6(%arg0: i32) -> (i32, i32) {
    %c0_i32 = arith.constant 0 : i32
    %c0_i32_0 = arith.constant 0 : i32
    %c0_i32_1 = arith.constant 0 : i32
    return %c0_i32, %c0_i32_0 : i32, i32
  }
  func.func @transform_7(%arg0: i32) -> (i32, i32) {
    %c0_i32 = arith.constant 0 : i32
    %c0_i32_0 = arith.constant 0 : i32
    return %arg0, %c0_i32 : i32, i32
  }
}

</mosaic_0001>

<bundles_post_ra>
// kernel: tpu_custom_call.1
= control target key start
LH: loop header
LB: loop body
LE: loop exit
PB: predicated region body
PF: predicated region fallthrough
CT: control target
= control target key end

     0   :  { %12 = vsyncpa [#allocation3], 0  ;;  %s1460_s0 = inlined_call_operand.hbm [shape: f32[8,896], index: 0, kind: input, shape index: {}]   ;;  %s1461_s1 = inlined_call_operand.hbm [shape: f32[896,256], index: 1, kind: input, shape index: {}]   ;;  %s1462_s2 = inlined_call_operand.vmem [shape: f32[1,256], index: 2, kind: input, shape index: {}]   ;;  %s1463_s3 = inlined_call_operand.hbm [shape: f32[256,128], index: 3, kind: input, shape index: {}]   ;;  %s1464_s4 = inlined_call_operand.vmem [shape: f32[1,128], index: 4, kind: input, shape index: {}]   ;;  %s1465_s5 = inlined_call_operand.hbm [shape: f32[128,128], index: 5, kind: input, shape index: {}]   ;;  %s1466_s6 = inlined_call_operand.vmem [shape: f32[1,128], index: 6, kind: input, shape index: {}]   ;;  %s1467_s7 = inlined_call_operand.hbm [shape: f32[8,128], index: 7, kind: output, shape index: {}]  }
   0x1   :  { %13 = vsyncpa [#allocation6], 0 }
   0x2   :  { %14 = vsyncpa [#allocation9], 0 }
   0x3   :  { %15 = vsyncpa [#allocation4], 0  ;;  %s1337_s24 = smov [#allocation5]   ;;  %s1219_s28 = scalar_lea.hbm %s1461_s1, 28672 }
   0x4   :  { %s31_s25 = sshll.u32 %s1337_s24, 4  ;;  %p1220_p0 = scmp.ne.s32.totalorder %s1461_s1, %s1219_s28  ;;  %s32_s25 = int_to_ptr.vmem [resolvable:$true] %s31_s25 }
   0x5   :  { %p1223_p1 = scmp.lt.u32.totalorder %s1219_s28, %s1461_s1 }
   0x7   :  { %p1225_p2 = pnand %p1223_p1, %p1220_p0 }
   0x9   :  { %1228 = shalt.err (!%p1225_p2)
}
   0xa   :  { %s1229_s10 = scalar_lea.vmem %s32_s25, 28672  ;;  %p1234_p4 = scmp.lt.s32.totalorder %s32_s25, %s32_s25 }
   0xb   :  { %p1230_p3 = scmp.ne.s32.totalorder %s32_s25, %s1229_s10  ;;  %p1235_p5 = scmp.lt.s32.totalorder %s1229_s10, %s1229_s10 }
   0xd   :  { %p1236_p6 = por %p1235_p5, %p1234_p4 }
   0xf   :  { %p1237_p7 = pnand %p1236_p6, %p1230_p3 }
  0x11   :  { %1240 = shalt.err (!%p1237_p7)
}
  0x12   :  { %s1338_s11 = smov 256   ;;  %s1339_s12 = smov 16  }
  0x13   :  { %37 = dma.hbm_to_vmem [thread:$0]  %s1461_s1, 28672, %s32_s25, [#allocation6], %s1338_s11, %s1338_s11, %s1339_s12  }
  0x14   :  { %s1340_s15 = smov [#allocation2]   ;;  %s1341_s17 = smov [#allocation7]  }
  0x15   :  { %s22_s16 = sshll.u32 %s1340_s15, 4  ;;  %s45_s18 = sshll.u32 %s1341_s17, 4  ;;  %s23_s16 = int_to_ptr.vmem [resolvable:$true] %s22_s16  ;;  %s46_s18 = int_to_ptr.vmem [resolvable:$true] %s45_s18 }
  0x16   :  { %s1241_s21 = scalar_lea.hbm %s1460_s0, 896 }
  0x17   :  { %p1242_p8 = scmp.ne.s32.totalorder %s1460_s0, %s1241_s21  ;;  %p1245_p9 = scmp.lt.u32.totalorder %s1241_s21, %s1460_s0 }
  0x19   :  { %p1247_p10 = pnand %p1245_p9, %p1242_p8 }
  0x1b   :  { %1250 = shalt.err (!%p1247_p10)
}
  0x1c   :  { %s1251_s1 = scalar_lea.vmem %s23_s16, 896  ;;  %p1256_p12 = scmp.lt.s32.totalorder %s23_s16, %s23_s16 }
  0x1d   :  { %p1252_p11 = scmp.ne.s32.totalorder %s23_s16, %s1251_s1  ;;  %p1257_p13 = scmp.lt.s32.totalorder %s1251_s1, %s1251_s1 }
  0x1f   :  { %p1258_p0 = por %p1257_p13, %p1256_p12 }
  0x21   :  { %p1259_p1 = pnand %p1258_p0, %p1252_p11 }
  0x23   :  { %1262 = shalt.err (!%p1259_p1)
}
  0x24   :  { %25 = dma.hbm_to_vmem [thread:$0]  %s1460_s0, 896, %s23_s16, [#allocation3]  }
  0x25   :  { %s1263_s30 = scalar_lea.hbm %s1463_s3, 4096 }
  0x26   :  { %p1264_p2 = scmp.ne.s32.totalorder %s1463_s3, %s1263_s30  ;;  %p1267_p3 = scmp.lt.u32.totalorder %s1263_s30, %s1463_s3 }
  0x28   :  { %p1269_p4 = pnand %p1267_p3, %p1264_p2 }
  0x2a   :  { %1272 = shalt.err (!%p1269_p4)
}
  0x2b   :  { %s1273_s12 = scalar_lea.vmem %s46_s18, 4096  ;;  %p1278_p6 = scmp.lt.s32.totalorder %s46_s18, %s46_s18 }
  0x2c   :  { %p1274_p5 = scmp.ne.s32.totalorder %s46_s18, %s1273_s12  ;;  %p1279_p7 = scmp.lt.s32.totalorder %s1273_s12, %s1273_s12 }
  0x2e   :  { %p1280_p8 = por %p1279_p7, %p1278_p6 }
  0x30   :  { %p1281_p9 = pnand %p1280_p8, %p1274_p5 }
  0x32   :  { %1284 = shalt.err (!%p1281_p9)
}
  0x33   :  { %s1342_s0 = smov 128   ;;  %s1343_s13 = smov 8  }
  0x34   :  { %51 = dma.hbm_to_vmem [thread:$0]  %s1463_s3, 4096, %s46_s18, [#allocation6], %s1342_s0, %s1342_s0, %s1343_s13  }
  0x35   :  { %s1344_s16 = smov [#allocation8]   ;;  %s1285_s21 = scalar_lea.hbm %s1465_s5, 2048 }
  0x36   :  { %s59_s17 = sshll.u32 %s1344_s16, 4  ;;  %p1286_p10 = scmp.ne.s32.totalorder %s1465_s5, %s1285_s21  ;;  %s60_s17 = int_to_ptr.vmem [resolvable:$true] %s59_s17 }
  0x37   :  { %p1289_p11 = scmp.lt.u32.totalorder %s1285_s21, %s1465_s5 }
  0x39   :  { %p1291_p12 = pnand %p1289_p11, %p1286_p10 }
  0x3b   :  { %1294 = shalt.err (!%p1291_p12)
}
  0x3c   :  { %s1295_s1 = scalar_lea.vmem %s60_s17, 2048  ;;  %p1300_p0 = scmp.lt.s32.totalorder %s60_s17, %s60_s17 }
  0x3d   :  { %p1296_p13 = scmp.ne.s32.totalorder %s60_s17, %s1295_s1  ;;  %p1301_p1 = scmp.lt.s32.totalorder %s1295_s1, %s1295_s1 }
  0x3f   :  { %p1302_p2 = por %p1301_p1, %p1300_p0 }
  0x41   :  { %p1303_p3 = pnand %p1302_p2, %p1296_p13 }
  0x43   :  { %1306 = shalt.err (!%p1303_p3)
}
  0x44   :  { %65 = dma.hbm_to_vmem [thread:$0]  %s1465_s5, 2048, %s60_s17, [#allocation9], %s1342_s0, %s1342_s0, %s1343_s13  }
  0x45   :  { %1329 = dma.done.wait [#allocation3], 896  }
  0x46   :  { %1330 = vsyncadd [#allocation3], 4294966400 }
  0x47   :  { %1331 = dma.done.wait [#allocation6], 32768  }
  0x48   :  { %1332 = vsyncadd [#allocation6], 4294934528 }
  0x49   :  { %1333 = dma.done.wait [#allocation9], 2048  }
  0x4a   :  { %1334 = vsyncadd [#allocation9], 4294965248  ;;  %v152_v0 = vld [vmem:[#allocation5 + $0x208] sm:$0xff]  ;;  %v154_v1 = vld [vmem:[#allocation5 + $0x218] sm:$0xff]  ;;  %vm1347_vm0 = vmmov 0   ;;  %s1348_s30 = smov [#allocation10]  }
  0x4b   :  { %v151_v2 = vld [vmem:[#allocation5 + $0x200] sm:$0xff]  ;;  %v983_v3 = vpack.c.bf16 %v154_v1, %v152_v0  ;;  %v153_v4 = vld [vmem:[#allocation5 + $0x210] sm:$0xff]  ;;  %v156_v5 = vld [vmem:[#allocation5 + $0x228] sm:$0xff]  ;;  %s819_s8 = sshll.u32 %s1348_s30, 4  ;;  %s820_s8 = int_to_ptr.vmem [resolvable:$true] %s819_s8 }
  0x4c   :  { %v158_v6 = vld [vmem:[#allocation5 + $0x238] sm:$0xff]  ;;  %v985_v7 = vpack.c.bf16 %v153_v4, %v151_v2  ;;  %v155_v9 = vld [vmem:[#allocation5 + $0x220] sm:$0xff]  ;;  %v157_v10 = vld [vmem:[#allocation5 + $0x230] sm:$0xff]  ;;  %s1307_s9 = scalar_lea.vmem %s820_s8, 128  ;;  %p1312_p5 = scmp.lt.s32.totalorder %s820_s8, %s820_s8 }
  0x4d   :  { %v987_v8 = vpack.c.bf16 %v158_v6, %v156_v5  ;;  %v160_v11 = vld [vmem:[#allocation5 + $0x248] sm:$0xff]  ;;  %984 = vmatprep.subr.bf16.mxu0 %v983_v3  ;;  %v162_v12 = vld [vmem:[#allocation5 + $0x258] sm:$0xff]  ;;  %v989_v13 = vpack.c.bf16 %v157_v10, %v155_v9  ;;  %v159_v15 = vld [vmem:[#allocation5 + $0x240] sm:$0xff]  ;;  %p1308_p4 = scmp.ne.s32.totalorder %s820_s8, %s1307_s9  ;;  %p1313_p6 = scmp.lt.s32.totalorder %s1307_s9, %s1307_s9 }
  0x4e   :  { %986 = vmatpush1.bf16.msra.mxu0 %v985_v7  ;;  %v991_v14 = vpack.c.bf16 %v162_v12, %v160_v11  ;;  %v161_v16 = vld [vmem:[#allocation5 + $0x250] sm:$0xff]  ;;  %v164_v17 = vld [vmem:[#allocation5 + $0x268] sm:$0xff]  ;;  %v166_v18 = vld [vmem:[#allocation5 + $0x278] sm:$0xff] }
  0x4f   :  { %988 = vmatprep.subr.bf16.mxu0 %v987_v8  ;;  %v993_v19 = vpack.c.bf16 %v161_v16, %v159_v15  ;;  %v995_v20 = vpack.c.bf16 %v166_v18, %v164_v17  ;;  %v163_v21 = vld [vmem:[#allocation5 + $0x260] sm:$0xff]  ;;  %v165_v22 = vld [vmem:[#allocation5 + $0x270] sm:$0xff]  ;;  %v168_v23 = vld [vmem:[#allocation5 + $0x288] sm:$0xff]  ;;  %p1314_p7 = por %p1313_p6, %p1312_p5 }
  0x50   :  { %v170_v24 = vld [vmem:[#allocation5 + $0x298] sm:$0xff]  ;;  %v997_v25 = vpack.c.bf16 %v165_v22, %v163_v21  ;;  %v167_v27 = vld [vmem:[#allocation5 + $0x280] sm:$0xff]  ;;  %v169_v28 = vld [vmem:[#allocation5 + $0x290] sm:$0xff] }
  0x51   :  { %v999_v26 = vpack.c.bf16 %v170_v24, %v168_v23  ;;  %v172_v29 = vld [vmem:[#allocation5 + $0x2a8] sm:$0xff]  ;;  %v174_v30 = vld [vmem:[#allocation5 + $0x2b8] sm:$0xff]  ;;  %v1001_v31 = vpack.c.bf16 %v169_v28, %v167_v27  ;;  %v171_v33 = vld [vmem:[#allocation5 + $0x2a0] sm:$0xff]  ;;  %p1315_p8 = pnand %p1314_p7, %p1308_p4 }
  0x52   :  { %990 = vmatpush1.bf16.msra.mxu0 %v989_v13  ;;  %v1003_v32 = vpack.c.bf16 %v174_v30, %v172_v29  ;;  %v173_v34 = vld [vmem:[#allocation5 + $0x2b0] sm:$0xff]  ;;  %v176_v35 = vld [vmem:[#allocation5 + $0x2c8] sm:$0xff]  ;;  %v178_v36 = vld [vmem:[#allocation5 + $0x2d8] sm:$0xff] }
  0x53   :  { %992 = vmatprep.subr.bf16.mxu0 %v991_v14  ;;  %v1005_v37 = vpack.c.bf16 %v173_v34, %v171_v33  ;;  %v1007_v38 = vpack.c.bf16 %v178_v36, %v176_v35  ;;  %v175_v39 = vld [vmem:[#allocation5 + $0x2c0] sm:$0xff]  ;;  %v177_v40 = vld [vmem:[#allocation5 + $0x2d0] sm:$0xff]  ;;  %v180_v42 = vld [vmem:[#allocation5 + $0x2e8] sm:$0xff] }
  0x54   :  { %v83_v41 = vld [vmem:[#allocation2 + $0x18] sm:$0xff]  ;;  %v182_v43 = vld [vmem:[#allocation5 + $0x2f8] sm:$0xff]  ;;  %v1009_v44 = vpack.c.bf16 %v177_v40, %v175_v39  ;;  %v181_v47 = vld [vmem:[#allocation5 + $0x2f0] sm:$0xff] }
  0x55   :  { %458 = vmatprep.mubr.f32.mxu0 %v83_v41  ;;  %v1011_v45 = vpack.c.bf16 %v182_v43, %v180_v42  ;;  %v179_v46 = vld [vmem:[#allocation5 + $0x2e0] sm:$0xff]  ;;  %v184_v48 = vld [vmem:[#allocation5 + $0x308] sm:$0xff]  ;;  %v186_v49 = vld [vmem:[#allocation5 + $0x318] sm:$0xff] }
  0x56   :  { %994 = vmatpush1.bf16.msra.mxu0 %v993_v19  ;;  %v1013_v50 = vpack.c.bf16 %v181_v47, %v179_v46  ;;  %v1015_v51 = vpack.c.bf16 %v186_v49, %v184_v48  ;;  %v183_v52 = vld [vmem:[#allocation5 + $0x300] sm:$0xff]  ;;  %v185_v53 = vld [vmem:[#allocation5 + $0x310] sm:$0xff]  ;;  %v188_v54 = vld [vmem:[#allocation5 + $0x328] sm:$0xff] }
  0x57   :  { %996 = vmatprep.subr.bf16.mxu0 %v995_v20  ;;  %v190_v55 = vld [vmem:[#allocation5 + $0x338] sm:$0xff]  ;;  %v1017_v56 = vpack.c.bf16 %v185_v53, %v183_v52  ;;  %v187_v57 = vld [vmem:[#allocation5 + $0x320] sm:$0xff]  ;;  %v88_v58 = vld [vmem:[#allocation5 + $0x8] sm:$0xff] }
  0x58   :  { %v90_v59 = vld [vmem:[#allocation5 + $0x18] sm:$0xff]  ;;  %v1019_v60 = vpack.c.bf16 %v190_v55, %v188_v54  ;;  %v189_v61 = vld [vmem:[#allocation5 + $0x330] sm:$0xff]  ;;  %v87_v63 = vld [vmem:[#allocation5] sm:$0xff] }
  0x59   :  { %v919_v62 = vpack.c.bf16 %v90_v59, %v88_v58  ;;  %v89_v0 = vld [vmem:[#allocation5 + $0x10] sm:$0xff]  ;;  %v192_v1 = vld [vmem:[#allocation5 + $0x348] sm:$0xff]  ;;  %v194_v2 = vld [vmem:[#allocation5 + $0x358] sm:$0xff]  ;;  %v1021_v6 = vpack.c.bf16 %v189_v61, %v187_v57 }
  0x5a   :  { %998 = vmatpush1.bf16.msra.mxu0 %v997_v25  ;;  %v921_v3 = vpack.c.bf16 %v89_v0, %v87_v63  ;;  %v92_v4 = vld [vmem:[#allocation5 + $0x28] sm:$0xff]  ;;  %v94_v5 = vld [vmem:[#allocation5 + $0x38] sm:$0xff]  ;;  %v191_v7 = vld [vmem:[#allocation5 + $0x340] sm:$0xff]  ;;  %v1023_v11 = vpack.c.bf16 %v194_v2, %v192_v1 }
  0x5b   :  { %1000 = vmatprep.subr.bf16.mxu0 %v999_v26  ;;  %920 = vmatprep.subr.bf16.mxu1 %v919_v62  ;;  %v923_v8 = vpack.c.bf16 %v94_v5, %v92_v4  ;;  %v91_v9 = vld [vmem:[#allocation5 + $0x20] sm:$0xff]  ;;  %v93_v10 = vld [vmem:[#allocation5 + $0x30] sm:$0xff]  ;;  %v96_v14 = vld [vmem:[#allocation5 + $0x48] sm:$0xff] }
  0x5c   :  { %922 = vmatpush1.bf16.msra.mxu1 %v921_v3  ;;  %v193_v12 = vld [vmem:[#allocation5 + $0x350] sm:$0xff]  ;;  %v925_v13 = vpack.c.bf16 %v93_v10, %v91_v9  ;;  %v98_v15 = vld [vmem:[#allocation5 + $0x58] sm:$0xff]  ;;  %v196_v16 = vld [vmem:[#allocation5 + $0x368] sm:$0xff] }
  0x5d   :  { %v198_v17 = vld [vmem:[#allocation5 + $0x378] sm:$0xff]  ;;  %924 = vmatprep.subr.bf16.mxu1 %v923_v8  ;;  %v927_v18 = vpack.c.bf16 %v98_v15, %v96_v14  ;;  %v95_v19 = vld [vmem:[#allocation5 + $0x40] sm:$0xff]  ;;  %v97_v20 = vld [vmem:[#allocation5 + $0x50] sm:$0xff]  ;;  %v1025_v21 = vpack.c.bf16 %v193_v12, %v191_v7 }
  0x5e   :  { %1002 = vmatpush1.bf16.msra.mxu0 %v1001_v31  ;;  %v195_v22 = vld [vmem:[#allocation5 + $0x360] sm:$0xff]  ;;  %v929_v23 = vpack.c.bf16 %v97_v20, %v95_v19  ;;  %v100_v24 = vld [vmem:[#allocation5 + $0x68] sm:$0xff]  ;;  %v102_v25 = vld [vmem:[#allocation5 + $0x78] sm:$0xff]  ;;  %v1027_v26 = vpack.c.bf16 %v198_v17, %v196_v16 }
  0x5f   :  { %1004 = vmatprep.subr.bf16.mxu0 %v1003_v32  ;;  %v197_v27 = vld [vmem:[#allocation5 + $0x370] sm:$0xff]  ;;  %v931_v28 = vpack.c.bf16 %v102_v25, %v100_v24  ;;  %v99_v29 = vld [vmem:[#allocation5 + $0x60] sm:$0xff]  ;;  %v200_v31 = vld [vmem:[#allocation5 + $0x388] sm:$0xff] }
  0x60   :  { %926 = vmatpush1.bf16.msra.mxu1 %v925_v13  ;;  %v101_v30 = vld [vmem:[#allocation5 + $0x70] sm:$0xff]  ;;  %v202_v32 = vld [vmem:[#allocation5 + $0x398] sm:$0xff]  ;;  %v104_v33 = vld [vmem:[#allocation5 + $0x88] sm:$0xff]  ;;  %v1029_v35 = vpack.c.bf16 %v197_v27, %v195_v22 }
  0x61   :  { %928 = vmatprep.subr.bf16.mxu1 %v927_v18  ;;  %v106_v34 = vld [vmem:[#allocation5 + $0x98] sm:$0xff]  ;;  %v199_v36 = vld [vmem:[#allocation5 + $0x380] sm:$0xff]  ;;  %v1031_v39 = vpack.c.bf16 %v202_v32, %v200_v31  ;;  %v204_v40 = vld [vmem:[#allocation5 + $0x3a8] sm:$0xff] }
  0x62   :  { %1006 = vmatpush1.bf16.msra.mxu0 %v1005_v37  ;;  %v201_v37 = vld [vmem:[#allocation5 + $0x390] sm:$0xff]  ;;  %v935_v41 = vpack.c.bf16 %v106_v34, %v104_v33  ;;  %v103_v42 = vld [vmem:[#allocation5 + $0x80] sm:$0xff]  ;;  %v110_v46 = vld [vmem:[#allocation5 + $0xb8] sm:$0xff] }
  0x63   :  { %1008 = vmatprep.subr.bf16.mxu0 %v1007_v38  ;;  %v933_v38 = vpack.c.bf16 %v101_v30, %v99_v29  ;;  %v105_v43 = vld [vmem:[#allocation5 + $0x90] sm:$0xff]  ;;  %v1033_v47 = vpack.c.bf16 %v201_v37, %v199_v36  ;;  %v203_v48 = vld [vmem:[#allocation5 + $0x3a0] sm:$0xff]  ;;  %v208_v52 = vld [vmem:[#allocation5 + $0x3c8] sm:$0xff] }
  0x64   :  { %930 = vmatpush1.bf16.msra.mxu1 %v929_v23  ;;  %v205_v49 = vld [vmem:[#allocation5 + $0x3b0] sm:$0xff]  ;;  %v107_v54 = vld [vmem:[#allocation5 + $0xa0] sm:$0xff]  ;;  %v112_v57 = vld [vmem:[#allocation5 + $0xc8] sm:$0xff] }
  0x65   :  { %932 = vmatprep.subr.bf16.mxu1 %v931_v28  ;;  %v109_v55 = vld [vmem:[#allocation5 + $0xb0] sm:$0xff]  ;;  %v114_v58 = vld [vmem:[#allocation5 + $0xd8] sm:$0xff]  ;;  %v1037_v59 = vpack.c.bf16 %v205_v49, %v203_v48  ;;  %v212_v0 = vld [vmem:[#allocation5 + $0x3e8] sm:$0xff] }
  0x66   :  { %1010 = vmatpush1.bf16.msra.mxu0 %v1009_v44  ;;  %v206_v44 = vld [vmem:[#allocation5 + $0x3b8] sm:$0xff]  ;;  %v209_v61 = vld [vmem:[#allocation5 + $0x3d0] sm:$0xff]  ;;  %v941_v62 = vpack.c.bf16 %v109_v55, %v107_v54  ;;  %v943_v1 = vpack.c.bf16 %v114_v58, %v112_v57  ;;  %v111_v2 = vld [vmem:[#allocation5 + $0xc0] sm:$0xff] }
  0x67   :  { %1012 = vmatprep.subr.bf16.mxu0 %v1011_v45  ;;  %v108_v45 = vld [vmem:[#allocation5 + $0xa8] sm:$0xff]  ;;  %v113_v3 = vld [vmem:[#allocation5 + $0xd0] sm:$0xff]  ;;  %v214_v4 = vld [vmem:[#allocation5 + $0x3f8] sm:$0xff] }
  0x68   :  { %934 = vmatpush1.bf16.msra.mxu1 %v933_v38  ;;  %v939_v53 = vpack.c.bf16 %v110_v46, %v108_v45  ;;  %v116_v5 = vld [vmem:[#allocation5 + $0xe8] sm:$0xff]  ;;  %v211_v8 = vld [vmem:[#allocation5 + $0x3e0] sm:$0xff]  ;;  %v213_v9 = vld [vmem:[#allocation5 + $0x3f0] sm:$0xff]  ;;  %v945_v10 = vpack.c.bf16 %v113_v3, %v111_v2 }
  0x69   :  { %936 = vmatprep.subr.bf16.mxu1 %v935_v41  ;;  %v216_v12 = vld [vmem:[#allocation5 + $0x408] sm:$0xff]  ;;  %v115_v14 = vld [vmem:[#allocation5 + $0xe0] sm:$0xff]  ;;  %v117_v15 = vld [vmem:[#allocation5 + $0xf0] sm:$0xff]  ;;  %v1045_v19 = vpack.c.bf16 %v213_v9, %v211_v8 }
  0x6a   :  { %1014 = vmatpush1.bf16.msra.mxu0 %v1013_v50  ;;  %v937_v50 = vpack.c.bf16 %v105_v43, %v103_v42  ;;  %v218_v16 = vld [vmem:[#allocation5 + $0x418] sm:$0xff]  ;;  %v120_v17 = vld [vmem:[#allocation5 + $0x108] sm:$0xff]  ;;  %v215_v20 = vld [vmem:[#allocation5 + $0x400] sm:$0xff] }
  0x6b   :  { %1016 = vmatprep.subr.bf16.mxu0 %v1015_v51  ;;  %v1035_v51 = vpack.c.bf16 %v206_v44, %v204_v40  ;;  %v122_v18 = vld [vmem:[#allocation5 + $0x118] sm:$0xff]  ;;  %v1047_v22 = vpack.c.bf16 %v218_v16, %v216_v12  ;;  %v217_v23 = vld [vmem:[#allocation5 + $0x410] sm:$0xff]  ;;  %v119_v25 = vld [vmem:[#allocation5 + $0x100] sm:$0xff] }
  0x6c   :  { %938 = vmatpush1.bf16.msra.mxu1 %v937_v50  ;;  %v951_v24 = vpack.c.bf16 %v122_v18, %v120_v17  ;;  %v220_v27 = vld [vmem:[#allocation5 + $0x428] sm:$0xff]  ;;  %v222_v28 = vld [vmem:[#allocation5 + $0x438] sm:$0xff]  ;;  %v1049_v32 = vpack.c.bf16 %v217_v23, %v215_v20  ;;  %v219_v33 = vld [vmem:[#allocation5 + $0x420] sm:$0xff] }
  0x6d   :  { %940 = vmatprep.subr.bf16.mxu1 %v939_v53  ;;  %v82_v29 = vld [vmem:[#allocation2 + $0x10] sm:$0xff]  ;;  %v124_v30 = vld [vmem:[#allocation5 + $0x128] sm:$0xff]  ;;  %v221_v34 = vld [vmem:[#allocation5 + $0x430] sm:$0xff]  ;;  %v1051_v37 = vpack.c.bf16 %v222_v28, %v220_v27 }
  0x6e   :  { %1018 = vmatpush1.bf16.msra.mxu0 %v1017_v56  ;;  %v210_v56 = vld [vmem:[#allocation5 + $0x3d8] sm:$0xff]  ;;  %v125_v40 = vld [vmem:[#allocation5 + $0x130] sm:$0xff]  ;;  %v128_v43 = vld [vmem:[#allocation5 + $0x148] sm:$0xff]  ;;  %v1053_v45 = vpack.c.bf16 %v221_v34, %v219_v33 }
  0x6f   :  { %1020 = vmatprep.subr.bf16.mxu0 %v1019_v60  ;;  %v207_v60 = vld [vmem:[#allocation5 + $0x3c0] sm:$0xff]  ;;  %v1039_v63 = vpack.c.bf16 %v210_v56, %v208_v52  ;;  %v126_v31 = vld [vmem:[#allocation5 + $0x138] sm:$0xff]  ;;  %v85_v41 = vld [vmem:[#allocation2 + $0x28] sm:$0xff] }
  0x70   :  { %v1041_v7 = vpack.c.bf16 %v209_v61, %v207_v60  ;;  %942 = vmatpush1.bf16.msra.mxu1 %v941_v62  ;;  %v226_v38 = vld [vmem:[#allocation5 + $0x458] sm:$0xff]  ;;  %v955_v42 = vpack.c.bf16 %v126_v31, %v124_v30  ;;  %v223_v46 = vld [vmem:[#allocation5 + $0x440] sm:$0xff]  ;;  %v228_v50 = vld [vmem:[#allocation5 + $0x468] sm:$0xff] }
  0x71   :  { %944 = vmatprep.subr.bf16.mxu1 %v943_v1  ;;  %v130_v44 = vld [vmem:[#allocation5 + $0x158] sm:$0xff]  ;;  %v127_v52 = vld [vmem:[#allocation5 + $0x140] sm:$0xff]  ;;  %v129_v53 = vld [vmem:[#allocation5 + $0x150] sm:$0xff] }
  0x72   :  { %1022 = vmatpush1.bf16.msra.mxu0 %v1021_v6  ;;  %v118_v6 = vld [vmem:[#allocation5 + $0xf8] sm:$0xff]  ;;  %v132_v55 = vld [vmem:[#allocation5 + $0x168] sm:$0xff]  ;;  %v227_v58 = vld [vmem:[#allocation5 + $0x460] sm:$0xff]  ;;  %v961_v61 = vpack.c.bf16 %v129_v53, %v127_v52 }
  0x73   :  { %1024 = vmatprep.subr.bf16.mxu0 %v1023_v11  ;;  %v1043_v11 = vpack.c.bf16 %v214_v4, %v212_v0  ;;  %v947_v13 = vpack.c.bf16 %v118_v6, %v116_v5  ;;  %v230_v54 = vld [vmem:[#allocation5 + $0x478] sm:$0xff]  ;;  %v232_v60 = vld [vmem:[#allocation5 + $0x488] sm:$0xff]  ;;  %v131_v1 = vld [vmem:[#allocation5 + $0x160] sm:$0xff] }
  0x74   :  { %946 = vmatpush1.bf16.msra.mxu1 %v945_v10  ;;  %v134_v56 = vld [vmem:[#allocation5 + $0x178] sm:$0xff]  ;;  %v1059_v62 = vpack.c.bf16 %v230_v54, %v228_v50  ;;  %v133_v2 = vld [vmem:[#allocation5 + $0x170] sm:$0xff]  ;;  %v136_v3 = vld [vmem:[#allocation5 + $0x188] sm:$0xff] }
  0x75   :  { %948 = vmatprep.subr.bf16.mxu1 %v947_v13  ;;  %v963_v0 = vpack.c.bf16 %v134_v56, %v132_v55  ;;  %v138_v4 = vld [vmem:[#allocation5 + $0x198] sm:$0xff]  ;;  %v81_v5 = vld [vmem:[#allocation2 + $0x8] sm:$0xff]  ;;  %v965_v9 = vpack.c.bf16 %v133_v2, %v131_v1  ;;  %v135_v13 = vld [vmem:[#allocation5 + $0x180] sm:$0xff] }
  0x76   :  { %1026 = vmatpush1.bf16.msra.mxu0 %v1025_v21  ;;  %v949_v21 = vpack.c.bf16 %v117_v15, %v115_v14  ;;  %387 = vmatprep.mubr.f32.mxu1 %v81_v5  ;;  %v233_v8 = vld [vmem:[#allocation5 + $0x490] sm:$0xff]  ;;  %v967_v12 = vpack.c.bf16 %v138_v4, %v136_v3  ;;  %v238_v15 = vld [vmem:[#allocation5 + $0x4b8] sm:$0xff]  ;;  %v140_v16 = vld [vmem:[#allocation5 + $0x1a8] sm:$0xff] }
  0x77   :  { %1028 = vmatprep.subr.bf16.mxu0 %v1027_v26  ;;  %v121_v26 = vld [vmem:[#allocation5 + $0x110] sm:$0xff]  ;;  %v142_v17 = vld [vmem:[#allocation5 + $0x1b8] sm:$0xff]  ;;  %v240_v23 = vld [vmem:[#allocation5 + $0x4c8] sm:$0xff] }
  0x78   :  { %950 = vmatpush1.bf16.msra.mxu1 %v949_v21  ;;  %v953_v36 = vpack.c.bf16 %v121_v26, %v119_v25  ;;  %v137_v14 = vld [vmem:[#allocation5 + $0x190] sm:$0xff]  ;;  %v139_v25 = vld [vmem:[#allocation5 + $0x1a0] sm:$0xff]  ;;  %v242_v27 = vld [vmem:[#allocation5 + $0x4d8] sm:$0xff] }
  0x79   :  { %952 = vmatprep.subr.bf16.mxu1 %v951_v24  ;;  %v237_v20 = vld [vmem:[#allocation5 + $0x4b0] sm:$0xff]  ;;  %v969_v21 = vpack.c.bf16 %v137_v14, %v135_v13  ;;  %v971_v24 = vpack.c.bf16 %v142_v17, %v140_v16  ;;  %v144_v28 = vld [vmem:[#allocation5 + $0x1c8] sm:$0xff]  ;;  %v239_v31 = vld [vmem:[#allocation5 + $0x4c0] sm:$0xff]  ;;  %v1071_v34 = vpack.c.bf16 %v242_v27, %v240_v23 }
  0x7a   :  { %1030 = vmatpush1.bf16.msra.mxu0 %v1029_v35  ;;  %v224_v35 = vld [vmem:[#allocation5 + $0x448] sm:$0xff]  ;;  %v141_v26 = vld [vmem:[#allocation5 + $0x1b0] sm:$0xff]  ;;  %v625_v52 = vld [vmem:[#allocation7 + $0x80] sm:$0xff] }
  0x7b   :  { %1032 = vmatprep.subr.bf16.mxu0 %v1031_v39  ;;  %v123_v39 = vld [vmem:[#allocation5 + $0x120] sm:$0xff]  ;;  %v1055_v49 = vpack.c.bf16 %v226_v38, %v224_v35  ;;  %v973_v33 = vpack.c.bf16 %v141_v26, %v139_v25  ;;  %v244_v35 = vld [vmem:[#allocation5 + $0x4e8] sm:$0xff]  ;;  %v145_v38 = vld [vmem:[#allocation5 + $0x1d0] sm:$0xff] }
  0x7c   :  { %954 = vmatpush1.bf16.msra.mxu1 %v953_v36  ;;  %v957_v48 = vpack.c.bf16 %v125_v40, %v123_v39  ;;  %v246_v39 = vld [vmem:[#allocation5 + $0x4f8] sm:$0xff]  ;;  %v148_v40 = vld [vmem:[#allocation5 + $0x1e8] sm:$0xff]  ;;  %v149_v50 = vld [vmem:[#allocation5 + $0x1f0] sm:$0xff] }
  0x7d   :  { %956 = vmatprep.subr.bf16.mxu1 %v955_v42  ;;  %v626_v53 = vld [vmem:[#allocation7 + $0x88] sm:$0xff]  ;;  %v247_v55 = vld [vmem:[#allocation5 + $0x500] sm:$0xff]  ;;  %v249_v56 = vld [vmem:[#allocation5 + $0x510] sm:$0xff] }
  0x7e   :  { %1034 = vmatpush1.bf16.msra.mxu0 %v1033_v47  ;;  %v225_v47 = vld [vmem:[#allocation5 + $0x450] sm:$0xff]  ;;  %v628_v1 = vld [vmem:[#allocation7 + $0x98] sm:$0xff]  ;;  %v1081_v2 = vpack.c.bf16 %v249_v56, %v247_v55  ;;  %v251_v3 = vld [vmem:[#allocation5 + $0x520] sm:$0xff] }
  0x7f   :  { %1036 = vmatprep.subr.bf16.mxu0 %v1035_v51  ;;  %v959_v51 = vpack.c.bf16 %v130_v44, %v128_v43  ;;  %v1057_v57 = vpack.c.bf16 %v225_v47, %v223_v46  ;;  %v243_v43 = vld [vmem:[#allocation5 + $0x4e0] sm:$0xff]  ;;  %v245_v44 = vld [vmem:[#allocation5 + $0x4f0] sm:$0xff]  ;;  %v1075_v46 = vpack.c.bf16 %v246_v39, %v244_v35  ;;  %v248_v47 = vld [vmem:[#allocation5 + $0x508] sm:$0xff] }
  0x80   :  { %958 = vmatpush1.bf16.msra.mxu1 %v957_v48  ;;  %v1077_v54 = vpack.c.bf16 %v245_v44, %v243_v43  ;;  %v253_v4 = vld [vmem:[#allocation5 + $0x530] sm:$0xff]  ;;  %v80_v5 = vld [vmem:[#allocation2] sm:$0xff]  ;;  %v629_v13 = vld [vmem:[#allocation7 + $0xa0] sm:$0xff] }
  0x81   :  { %960 = vmatprep.subr.bf16.mxu1 %v959_v51  ;;  %v250_v51 = vld [vmem:[#allocation5 + $0x518] sm:$0xff]  ;;  %v630_v14 = vld [vmem:[#allocation7 + $0xa8] sm:$0xff]  ;;  %v255_v16 = vld [vmem:[#allocation5 + $0x540] sm:$0xff] }
  0x82   :  { %1038 = vmatpush1.bf16.msra.mxu0 %v1037_v59  ;;  %v229_v59 = vld [vmem:[#allocation5 + $0x470] sm:$0xff]  ;;  %v614_v23 = vld [vmem:[#allocation7 + $0x28] sm:$0xff]  ;;  %v632_v26 = vld [vmem:[#allocation7 + $0xb8] sm:$0xff] }
  0x83   :  { %1040 = vmatprep.subr.bf16.mxu0 %v1039_v63  ;;  %v234_v63 = vld [vmem:[#allocation5 + $0x498] sm:$0xff]  ;;  %v1061_v6 = vpack.c.bf16 %v229_v59, %v227_v58  ;;  %v1079_v58 = vpack.c.bf16 %v250_v51, %v248_v47  ;;  %v252_v59 = vld [vmem:[#allocation5 + $0x528] sm:$0xff]  ;;  %v257_v17 = vld [vmem:[#allocation5 + $0x550] sm:$0xff] }
  0x84   :  { %962 = vmatpush1.bf16.msra.mxu1 %v961_v61  ;;  %v1063_v10 = vpack.c.bf16 %v234_v63, %v232_v60  ;;  %v1143_v60 = vpack.c.bf16 %v626_v53, %v625_v52  ;;  %v609_v61 = vld [vmem:[#allocation7] sm:$0xff]  ;;  %v254_v63 = vld [vmem:[#allocation5 + $0x538] sm:$0xff]  ;;  %v631_v25 = vld [vmem:[#allocation7 + $0xb0] sm:$0xff]  ;;  %v1089_v27 = vpack.c.bf16 %v257_v17, %v255_v16 }
  0x85   :  { %964 = vmatprep.subr.bf16.mxu1 %v963_v0  ;;  %v627_v0 = vld [vmem:[#allocation7 + $0x90] sm:$0xff]  ;;  %v616_v35 = vld [vmem:[#allocation7 + $0x38] sm:$0xff]  ;;  %v268_v44 = vld [vmem:[#allocation5 + $0x5a8] sm:$0xff] }
  0x86   :  { %1042 = vmatpush1.bf16.msra.mxu0 %v1041_v7  ;;  %v231_v7 = vld [vmem:[#allocation5 + $0x480] sm:$0xff]  ;;  %v618_v47 = vld [vmem:[#allocation7 + $0x48] sm:$0xff]  ;;  %v269_v55 = vld [vmem:[#allocation5 + $0x5b0] sm:$0xff] }
  0x87   :  { %1044 = vmatprep.subr.bf16.mxu0 %v1043_v11  ;;  %v236_v11 = vld [vmem:[#allocation5 + $0x4a8] sm:$0xff]  ;;  %v1065_v18 = vpack.c.bf16 %v233_v8, %v231_v7  ;;  %v1083_v7 = vpack.c.bf16 %v254_v63, %v252_v59  ;;  %v267_v52 = vld [vmem:[#allocation5 + $0x5a0] sm:$0xff] }
  0x88   :  { %966 = vmatpush1.bf16.msra.mxu1 %v965_v9  ;;  %v256_v8 = vld [vmem:[#allocation5 + $0x548] sm:$0xff]  ;;  %v1147_v9 = vpack.c.bf16 %v628_v1, %v627_v0  ;;  %v271_v0 = vld [vmem:[#allocation5 + $0x5c0] sm:$0xff]  ;;  %v273_v1 = vld [vmem:[#allocation5 + $0x5d0] sm:$0xff] }
  0x89   :  { %968 = vmatprep.subr.bf16.mxu1 %v967_v12  ;;  %v258_v12 = vld [vmem:[#allocation5 + $0x558] sm:$0xff]  ;;  %v272_v59 = vld [vmem:[#allocation5 + $0x5c8] sm:$0xff] }
  0x8a   :  { %1046 = vmatpush1.bf16.msra.mxu0 %v1045_v19  ;;  %v235_v19 = vld [vmem:[#allocation5 + $0x4a0] sm:$0xff]  ;;  %v84_v16 = vld [vmem:[#allocation2 + $0x20] sm:$0xff] }
  0x8b   :  { %1048 = vmatprep.subr.bf16.mxu0 %v1047_v22  ;;  %v1067_v22 = vpack.c.bf16 %v238_v15, %v236_v11  ;;  %v1069_v30 = vpack.c.bf16 %v237_v20, %v235_v19  ;;  %v612_v11 = vld [vmem:[#allocation7 + $0x18] sm:$0xff]  ;;  %v1085_v15 = vpack.c.bf16 %v253_v4, %v251_v3  ;;  %v1087_v19 = vpack.c.bf16 %v258_v12, %v256_v8  ;;  %v260_v20 = vld [vmem:[#allocation5 + $0x568] sm:$0xff]  ;;  %v279_v12 = vld [vmem:[#allocation5 + $0x600] sm:$0xff] }
  0x8c   :  { %970 = vmatpush1.bf16.msra.mxu1 %v969_v21  ;;  %v1151_v21 = vpack.c.bf16 %v630_v14, %v629_v13  ;;  %v278_v3 = vld [vmem:[#allocation5 + $0x5f8] sm:$0xff]  ;;  %v1105_v4 = vpack.c.bf16 %v273_v1, %v271_v0  ;;  %v280_v8 = vld [vmem:[#allocation5 + $0x608] sm:$0xff]  ;;  %v281_v13 = vld [vmem:[#allocation5 + $0x610] sm:$0xff] }
  0x8d   :  { %459 = vmatmul.mubr.f32.vlgmr.msra.gmra.mrb[0].mxu0 %v82_v29  ;;  %v146_v29 = vld [vmem:[#allocation5 + $0x1d8] sm:$0xff]  ;;  %972 = vmatprep.subr.bf16.mxu1 %v971_v24  ;;  %v284_v14 = vld [vmem:[#allocation5 + $0x628] sm:$0xff]  ;;  %v1113_v17 = vpack.c.bf16 %v281_v13, %v279_v12 }
  0x8e   :  { %1050 = vmatpush1.bf16.msra.mxu0 %v1049_v32  ;;  %529 = vmatprep.mubr.f32.mxu0 %v85_v41  ;;  %v241_v32 = vld [vmem:[#allocation5 + $0x4d0] sm:$0xff]  ;;  %v975_v36 = vpack.c.bf16 %v146_v29, %v144_v28  ;;  %v150_v41 = vld [vmem:[#allocation5 + $0x1f8] sm:$0xff]  ;;  %v259_v28 = vld [vmem:[#allocation5 + $0x560] sm:$0xff] }
  0x8f   :  { %1052 = vmatprep.subr.bf16.mxu0 %v1051_v37  ;;  %v143_v37 = vld [vmem:[#allocation5 + $0x1c0] sm:$0xff]  ;;  %v1073_v42 = vpack.c.bf16 %v241_v32, %v239_v31  ;;  %v979_v48 = vpack.c.bf16 %v150_v41, %v148_v40  ;;  %v262_v24 = vld [vmem:[#allocation5 + $0x578] sm:$0xff]  ;;  %v261_v29 = vld [vmem:[#allocation5 + $0x570] sm:$0xff] }
  0x90   :  { %974 = vmatpush1.bf16.msra.mxu1 %v973_v33  ;;  %v1091_v31 = vpack.c.bf16 %v262_v24, %v260_v20  ;;  %v264_v32 = vld [vmem:[#allocation5 + $0x588] sm:$0xff]  ;;  %v1155_v33 = vpack.c.bf16 %v632_v26, %v631_v25  ;;  %v1093_v39 = vpack.c.bf16 %v261_v29, %v259_v28  ;;  %v263_v40 = vld [vmem:[#allocation5 + $0x580] sm:$0xff]  ;;  %v265_v41 = vld [vmem:[#allocation5 + $0x590] sm:$0xff]  ;;  %v1345_v24 = vmov 0.0  }
  0x91   :  { %976 = vmatprep.subr.bf16.mxu1 %v975_v36  ;;  %v266_v36 = vld [vmem:[#allocation5 + $0x598] sm:$0xff]  ;;  %v1097_v51 = vpack.c.bf16 %v265_v41, %v263_v40  ;;  %v285_v20 = vld [vmem:[#allocation5 + $0x630] sm:$0xff]  ;;  %v287_v26 = vld [vmem:[#allocation5 + $0x640] sm:$0xff] }
  0x92   :  { %1054 = vmatpush1.bf16.msra.mxu0 %v1053_v45  ;;  %v977_v45 = vpack.c.bf16 %v145_v38, %v143_v37  ;;  %v633_v37 = vld [vmem:[#allocation7 + $0xc0] sm:$0xff]  ;;  %v634_v38 = vld [vmem:[#allocation7 + $0xc8] sm:$0xff]  ;;  %v1095_v43 = vpack.c.bf16 %v266_v36, %v264_v32  ;;  %v294_v29 = vld [vmem:[#allocation5 + $0x678] sm:$0xff] }
  0x93   :  { %1056 = vmatprep.subr.bf16.mxu0 %v1055_v49  ;;  %v147_v49 = vld [vmem:[#allocation5 + $0x1e0] sm:$0xff]  ;;  %v292_v28 = vld [vmem:[#allocation5 + $0x668] sm:$0xff]  ;;  %v302_v41 = vld [vmem:[#allocation5 + $0x6b8] sm:$0xff] }
  0x94   :  { %978 = vmatpush1.bf16.msra.mxu1 %v977_v45  ;;  %v1159_v45 = vpack.c.bf16 %v634_v38, %v633_v37  ;;  %v291_v32 = vld [vmem:[#allocation5 + $0x660] sm:$0xff]  ;;  %v300_v40 = vld [vmem:[#allocation5 + $0x6a8] sm:$0xff] }
  0x95   :  { %980 = vmatprep.subr.bf16.mxu1 %v979_v48  ;;  %v270_v48 = vld [vmem:[#allocation5 + $0x5b8] sm:$0xff]  ;;  %v295_v38 = vld [vmem:[#allocation5 + $0x680] sm:$0xff]  ;;  %v622_v0 = vld [vmem:[#allocation7 + $0x68] sm:$0xff] }
  0x96   :  { %1058 = vmatpush1.bf16.msra.mxu0 %v1057_v57  ;;  %v981_v57 = vpack.c.bf16 %v149_v50, %v147_v49  ;;  %v635_v49 = vld [vmem:[#allocation7 + $0xd0] sm:$0xff]  ;;  %v636_v50 = vld [vmem:[#allocation7 + $0xd8] sm:$0xff] }
  0x97   :  { %1060 = vmatprep.subr.bf16.mxu0 %v1059_v62  ;;  %v610_v62 = vld [vmem:[#allocation7 + $0x8] sm:$0xff]  ;;  %v1163_v56 = vpack.c.bf16 %v636_v50, %v635_v49  ;;  %v303_v50 = vld [vmem:[#allocation5 + $0x6c0] sm:$0xff] }
  0x98   :  { %982 = vmatpush1.bf16.msra.mxu1 %v981_v57  ;;  %v619_v57 = vld [vmem:[#allocation7 + $0x50] sm:$0xff] }
  0x99   :  { %1144 = vmatprep.subr.bf16.mxu1 %v1143_v60  ;;  %v274_v60 = vld [vmem:[#allocation5 + $0x5d8] sm:$0xff] }
  0x9a   :  { %1062 = vmatpush1.bf16.msra.mxu0 %v1061_v6  ;;  %v1145_v6 = vpack.c.bf16 %v610_v62, %v609_v61  ;;  %v1101_v61 = vpack.c.bf16 %v269_v55, %v267_v52  ;;  %v1103_v63 = vpack.c.bf16 %v274_v60, %v272_v59  ;;  %v308_v52 = vld [vmem:[#allocation5 + $0x6e8] sm:$0xff]  ;;  %v86_v59 = vld [vmem:[#allocation2 + $0x30] sm:$0xff]  ;;  %v637_v60 = vld [vmem:[#allocation7 + $0xe0] sm:$0xff] }
  0x9b   :  { %1064 = vmatprep.subr.bf16.mxu0 %v1063_v10  ;;  %v611_v10 = vld [vmem:[#allocation7 + $0x10] sm:$0xff]  ;;  %388 = vmatmul.mubr.f32.vlgmr.msra.gmra.mrb[0].mxu1 %v80_v5 }
  0x9c   :  { %1146 = vmatpush3.bf16.msra.mxu1 %v1145_v6  ;;  %v275_v6 = vld [vmem:[#allocation5 + $0x5e0] sm:$0xff] }
  0x9d   :  { %1148 = vmatprep.subr.bf16.mxu1 %v1147_v9  ;;  %v282_v9 = vld [vmem:[#allocation5 + $0x618] sm:$0xff] }
  0x9e   :  { %1066 = vmatpush1.bf16.msra.mxu0 %v1065_v18  ;;  %v1149_v18 = vpack.c.bf16 %v612_v11, %v611_v10  ;;  %v1111_v11 = vpack.c.bf16 %v282_v9, %v280_v8  ;;  %v1346_v8 = vmov 0.0|0.0  }
  0x9f   :  { %1068 = vmatprep.subr.bf16.mxu0 %v1067_v22  ;;  %v613_v22 = vld [vmem:[#allocation7 + $0x20] sm:$0xff] }
  0xa0   :  { %1150 = vmatpush3.bf16.msra.mxu1 %v1149_v18 }
  0xa1   :  { %1152 = vmatprep.subr.bf16.mxu1 %v1151_v21  ;;  %v288_v21 = vld [vmem:[#allocation5 + $0x648] sm:$0xff] }
  0xa2   :  { %1070 = vmatpush1.bf16.msra.mxu0 %v1069_v30  ;;  %v1153_v30 = vpack.c.bf16 %v614_v23, %v613_v22  ;;  %v290_v22 = vld [vmem:[#allocation5 + $0x658] sm:$0xff] }
  0xa3   :  { %1072 = vmatprep.subr.bf16.mxu0 %v1071_v34  ;;  %v615_v34 = vld [vmem:[#allocation7 + $0x30] sm:$0xff]  ;;  %v1119_v25 = vpack.c.bf16 %v290_v22, %v288_v21 }
  0xa4   :  { %1154 = vmatpush3.bf16.msra.mxu1 %v1153_v30 }
  0xa5   :  { %1156 = vmatprep.subr.bf16.mxu1 %v1155_v33  ;;  %v293_v33 = vld [vmem:[#allocation5 + $0x670] sm:$0xff] }
  0xa6   :  { %1074 = vmatpush1.bf16.msra.mxu0 %v1073_v42  ;;  %v1157_v42 = vpack.c.bf16 %v616_v35, %v615_v34  ;;  %v296_v34 = vld [vmem:[#allocation5 + $0x688] sm:$0xff]  ;;  %v298_v35 = vld [vmem:[#allocation5 + $0x698] sm:$0xff]  ;;  %v1125_v36 = vpack.c.bf16 %v293_v33, %v291_v32  ;;  %v723_v33 = vld [vmem:[#allocation8 + $0x20] sm:$0xff] }
  0xa7   :  { %1076 = vmatprep.subr.bf16.mxu0 %v1075_v46  ;;  %v617_v46 = vld [vmem:[#allocation7 + $0x40] sm:$0xff]  ;;  %v1127_v37 = vpack.c.bf16 %v298_v35, %v296_v34  ;;  %v724_v34 = vld [vmem:[#allocation8 + $0x28] sm:$0xff] }
  0xa8   :  { %1158 = vmatpush3.bf16.msra.mxu1 %v1157_v42  ;;  %v1161_v53 = vpack.c.bf16 %v618_v47, %v617_v46  ;;  %v304_v46 = vld [vmem:[#allocation5 + $0x6c8] sm:$0xff]  ;;  %v306_v47 = vld [vmem:[#allocation5 + $0x6d8] sm:$0xff]  ;;  %v1182_v35 = vpack.c.bf16 %v724_v34, %v723_v33 }
  0xa9   :  { %1160 = vmatprep.subr.bf16.mxu1 %v1159_v45  ;;  %v301_v45 = vld [vmem:[#allocation5 + $0x6b0] sm:$0xff]  ;;  %v1135_v49 = vpack.c.bf16 %v306_v47, %v304_v46  ;;  %v732_v46 = vld [vmem:[#allocation8 + $0x68] sm:$0xff] }
  0xaa   :  { %1078 = vmatpush1.bf16.msra.mxu0 %v1077_v54  ;;  %v1099_v54 = vpack.c.bf16 %v270_v48, %v268_v44  ;;  %v299_v44 = vld [vmem:[#allocation5 + $0x6a0] sm:$0xff] }
  0xab   :  { %1080 = vmatprep.subr.bf16.mxu0 %v1079_v58  ;;  %v620_v58 = vld [vmem:[#allocation7 + $0x58] sm:$0xff]  ;;  %v1133_v48 = vpack.c.bf16 %v301_v45, %v299_v44  ;;  %v731_v45 = vld [vmem:[#allocation8 + $0x60] sm:$0xff] }
  0xac   :  { %1162 = vmatpush3.bf16.msra.mxu1 %v1161_v53  ;;  %v1165_v62 = vpack.c.bf16 %v620_v58, %v619_v57  ;;  %v310_v53 = vld [vmem:[#allocation5 + $0x6f8] sm:$0xff]  ;;  %v309_v57 = vld [vmem:[#allocation5 + $0x6f0] sm:$0xff]  ;;  %v1194_v47 = vpack.c.bf16 %v732_v46, %v731_v45 }
  0xad   :  { %1164 = vmatprep.subr.bf16.mxu1 %v1163_v56  ;;  %v1139_v55 = vpack.c.bf16 %v310_v53, %v308_v52  ;;  %v307_v56 = vld [vmem:[#allocation5 + $0x6e0] sm:$0xff]  ;;  %v830_v52 = vld [vmem:[%s1464_s4] ss:$0 sm:$0xff] }
  0xae   :  { %1082 = vmatpush1.bf16.msra.mxu0 %v1081_v2  ;;  %v276_v2 = vld [vmem:[#allocation5 + $0x5e8] sm:$0xff]  ;;  %v1141_v58 = vpack.c.bf16 %v309_v57, %v307_v56 }
  0xaf   :  { %1084 = vmatprep.subr.bf16.mxu0 %v1083_v7  ;;  %v1107_v5 = vpack.c.bf16 %v278_v3, %v276_v2  ;;  %v277_v7 = vld [vmem:[#allocation5 + $0x5f0] sm:$0xff]  ;;  %v640_v3 = vld [vmem:[#allocation7 + $0xf8] sm:$0xff]  ;;  %v831_v57 = vld [vmem:[%s1466_s6] ss:$0 sm:$0xff] }
  0xb0   :  { %1166 = vmatpush3.bf16.msra.mxu1 %v1165_v62  ;;  %v1109_v10 = vpack.c.bf16 %v277_v7, %v275_v6  ;;  %v639_v2 = vld [vmem:[#allocation7 + $0xf0] sm:$0xff]  ;;  %v624_v6 = vld [vmem:[#allocation7 + $0x78] sm:$0xff] }
  0xb2   :  { %1086 = vmatpush1.bf16.msra.mxu0 %v1085_v15  ;;  %v286_v15 = vld [vmem:[#allocation5 + $0x638] sm:$0xff] }
  0xb3   :  { %1088 = vmatprep.subr.bf16.mxu0 %v1087_v19  ;;  %v1115_v18 = vpack.c.bf16 %v286_v15, %v284_v14  ;;  %v283_v19 = vld [vmem:[#allocation5 + $0x620] sm:$0xff]  ;;  %v311_v14 = vld [vmem:[%s1462_s2] sm:$0x3] }
  0xb4   :  { %v1117_v23 = vpack.c.bf16 %v285_v20, %v283_v19 }
  0xb6   :  { %1090 = vmatpush1.bf16.msra.mxu0 %v1089_v27  ;;  %v289_v27 = vld [vmem:[#allocation5 + $0x650] sm:$0xff] }
  0xb7   :  { %1092 = vmatprep.subr.bf16.mxu0 %v1091_v31  ;;  %v1121_v30 = vpack.c.bf16 %v289_v27, %v287_v26  ;;  %v1123_v31 = vpack.c.bf16 %v294_v29, %v292_v28 }
  0xba   :  { %1094 = vmatpush1.bf16.msra.mxu0 %v1093_v39  ;;  %v297_v39 = vld [vmem:[#allocation5 + $0x690] sm:$0xff] }
  0xbb   :  { %1096 = vmatprep.subr.bf16.mxu0 %v1095_v43  ;;  %v1129_v42 = vpack.c.bf16 %v297_v39, %v295_v38  ;;  %v1131_v43 = vpack.c.bf16 %v302_v41, %v300_v40  ;;  %v727_v39 = vld [vmem:[#allocation8 + $0x40] sm:$0xff]  ;;  %v728_v40 = vld [vmem:[#allocation8 + $0x48] sm:$0xff] }
  0xbc   :  { %v1188_v41 = vpack.c.bf16 %v728_v40, %v727_v39 }
  0xbe   :  { %1098 = vmatpush1.bf16.msra.mxu0 %v1097_v51  ;;  %v305_v51 = vld [vmem:[#allocation5 + $0x6d0] sm:$0xff] }
  0xbf   :  { %1100 = vmatprep.subr.bf16.mxu0 %v1099_v54  ;;  %v1137_v54 = vpack.c.bf16 %v305_v51, %v303_v50 }
  0xc2   :  { %1102 = vmatpush1.bf16.msra.mxu0 %v1101_v61  ;;  %v638_v61 = vld [vmem:[#allocation7 + $0xe8] sm:$0xff] }
  0xc3   :  { %1104 = vmatprep.subr.bf16.mxu0 %v1103_v63  ;;  %v1167_v62 = vpack.c.bf16 %v638_v61, %v637_v60  ;;  %v621_v63 = vld [vmem:[#allocation7 + $0x60] sm:$0xff] }
  0xc4   :  { %v1169_v1 = vpack.c.bf16 %v622_v0, %v621_v63 }
  0xc5   :  { %1168 = vmatprep.subr.bf16.mxu1 %v1167_v62 }
  0xc6   :  { %1106 = vmatpush1.bf16.msra.mxu0 %v1105_v4  ;;  %1170 = vmatpush3.bf16.msra.mxu1 %v1169_v1  ;;  %v1171_v4 = vpack.c.bf16 %v640_v3, %v639_v2 }
  0xc7   :  { %1108 = vmatprep.subr.bf16.mxu0 %v1107_v5  ;;  %v623_v5 = vld [vmem:[#allocation7 + $0x70] sm:$0xff] }
  0xc8   :  { %v1173_v7 = vpack.c.bf16 %v624_v6, %v623_v5  ;;  %1172 = vmatprep.subr.bf16.mxu1 %v1171_v4 }
  0xca   :  { %1110 = vmatpush1.bf16.msra.mxu0 %v1109_v10  ;;  %1174 = vmatpush3.bf16.msra.mxu1 %v1173_v7 }
  0xcb   :  { %1112 = vmatprep.subr.bf16.mxu0 %v1111_v11  ;;  %1175 = vmatprep.subr.bf16.mxu1 %v1346_v8  ;;  %v313_v11 = vlaneseq }
  0xcd   :  { %530 = vmatmul.mubr.f32.vlgmr.msra.gmra.mrb[0].mxu0 %v84_v16  ;;  %v314_v12 = vshrl.u32 %v313_v11, 7 }
  0xce   :  { %1114 = vmatpush1.bf16.msra.mxu0 %v1113_v17  ;;  %600 = vmatprep.mubr.f32.mxu0 %v1345_v24 }
  0xcf   :  { %1116 = vmatprep.subr.bf16.mxu0 %v1115_v18  ;;  %v315_v13 = vsub.s32 0, %v314_v12  ;;  %v319_v15 = vsub.s32 1, %v314_v12 }
  0xd1   :  { %v316_v16 = vrot.slane %v311_v14, %v315_v13  ;;  %v320_v17 = vrot.slane %v311_v14, %v319_v15 }
  0xd2   :  { %1118 = vmatpush1.bf16.msra.mxu0 %v1117_v23  ;;  %v719_v23 = vld [vmem:[#allocation8] sm:$0xff] }
  0xd3   :  { %1120 = vmatprep.subr.bf16.mxu0 %v1119_v25  ;;  %v720_v25 = vld [vmem:[#allocation8 + $0x8] sm:$0xff] }
  0xd4   :  { %v1176_v28 = vpack.c.bf16 %v720_v25, %v719_v23 }
  0xd6   :  { %1122 = vmatpush1.bf16.msra.mxu0 %v1121_v30  ;;  %v721_v30 = vld [vmem:[#allocation8 + $0x10] sm:$0xff] }
  0xd7   :  { %1124 = vmatprep.subr.bf16.mxu0 %v1123_v31  ;;  %v722_v31 = vld [vmem:[#allocation8 + $0x18] sm:$0xff] }
  0xd8   :  { %v1179_v32 = vpack.c.bf16 %v722_v31, %v721_v30 }
  0xda   :  { %1126 = vmatpush1.bf16.msra.mxu0 %v1125_v36  ;;  %v725_v36 = vld [vmem:[#allocation8 + $0x30] sm:$0xff] }
  0xdb   :  { %1128 = vmatprep.subr.bf16.mxu0 %v1127_v37  ;;  %v726_v37 = vld [vmem:[#allocation8 + $0x38] sm:$0xff] }
  0xdc   :  { %v1185_v38 = vpack.c.bf16 %v726_v37, %v725_v36 }
  0xde   :  { %1130 = vmatpush1.bf16.msra.mxu0 %v1129_v42  ;;  %v729_v42 = vld [vmem:[#allocation8 + $0x50] sm:$0xff] }
  0xdf   :  { %1132 = vmatprep.subr.bf16.mxu0 %v1131_v43  ;;  %v730_v43 = vld [vmem:[#allocation8 + $0x58] sm:$0xff] }
  0xe0   :  { %v1191_v44 = vpack.c.bf16 %v730_v43, %v729_v42 }
  0xe2   :  { %1134 = vmatpush1.bf16.msra.mxu0 %v1133_v48  ;;  %v733_v48 = vld [vmem:[#allocation8 + $0x70] sm:$0xff] }
  0xe3   :  { %1136 = vmatprep.subr.bf16.mxu0 %v1135_v49  ;;  %v734_v49 = vld [vmem:[#allocation8 + $0x78] sm:$0xff] }
  0xe4   :  { %v1197_v50 = vpack.c.bf16 %v734_v49, %v733_v48 }
  0xe6   :  { %1138 = vmatpush1.bf16.msra.mxu0 %v1137_v54 }
  0xe7   :  { %1140 = vmatprep.subr.bf16.mxu0 %v1139_v55 }
  0xea   :  { %1142 = vmatpush1.bf16.msra.mxu0 %v1141_v58 }
  0xed   :  { %601 = vmatmul.mubr.f32.vlgmr.msra.gmra.mrb[0].mxu0 %v86_v59 }
 0x16e   :  { %v389_v9 = vpop.f32.mrb[0].mxu1 }
 0x16f   :  { %v391_v10 = vpop.f32.mrb[1].mxu1  ;;  %v390_v18 = vadd.f32 %v389_v9, %v316_v16 }
 0x170   :  { %v392_v19 = vadd.f32 %v391_v10, %v320_v17 }
 0x1c0   :  { %v602_v20 = vpop.f32.mrb[0].mxu0 }
 0x1c1   :  { %v1200_v21 = vadd.f32 %v602_v20, %v390_v18  ;;  %v604_v22 = vpop.f32.mrb[1].mxu0 }
 0x1c2   :  { %v1202_v26 = vadd.f32 %v604_v22, %v392_v19 }
 0x1c3   :  { %v607_v29 = vmax.f32 %v1200_v21, 0.0 }
 0x1c4   :  { %v608_v27 = vmax.f32 %v1202_v26, 0.0 }
 0x1c6   :  { %712 = vmatprep.mubr.f32.mxu1 %v608_v27 }
 0x1c7   :  { %713 = vmatmul.mubr.f32.vlgmr.msra.gmra.mrb[2].mxu1 %v607_v29 }
 0x1c8   :  { %1177 = vmatpush3.bf16.msra.mxu1 %v1176_v28  ;;  %916 = vmatprep.mubr.msk.f32.mxu1 %vm1347_vm0, %v1345_v24 }
 0x1c9   :  { %1178 = vmatprep.subr.bf16.mxu1 %v1346_v8 }
 0x1cc   :  { %1180 = vmatpush3.bf16.msra.mxu1 %v1179_v32 }
 0x1cd   :  { %1181 = vmatprep.subr.bf16.mxu1 %v1346_v8 }
 0x1d0   :  { %1183 = vmatpush3.bf16.msra.mxu1 %v1182_v35 }
 0x1d1   :  { %1184 = vmatprep.subr.bf16.mxu1 %v1346_v8 }
 0x1d4   :  { %1186 = vmatpush3.bf16.msra.mxu1 %v1185_v38 }
 0x1d5   :  { %1187 = vmatprep.subr.bf16.mxu1 %v1346_v8 }
 0x1d8   :  { %1189 = vmatpush3.bf16.msra.mxu1 %v1188_v41 }
 0x1d9   :  { %1190 = vmatprep.subr.bf16.mxu1 %v1346_v8 }
 0x1dc   :  { %1192 = vmatpush3.bf16.msra.mxu1 %v1191_v44 }
 0x1dd   :  { %1193 = vmatprep.subr.bf16.mxu1 %v1346_v8 }
 0x1e0   :  { %1195 = vmatpush3.bf16.msra.mxu1 %v1194_v47 }
 0x1e1   :  { %1196 = vmatprep.subr.bf16.mxu1 %v1346_v8 }
 0x1e4   :  { %1198 = vmatpush3.bf16.msra.mxu1 %v1197_v50 }
 0x29a   :  { %v864_v51 = vpop.f32.mrb[2].mxu1 }
 0x29b   :  { %v865_v53 = vpop.f32.mrb[3].mxu1 }
 0x29c   :  { %v866_v54 = vadd.f32 %v865_v53, %v864_v51 }
 0x29e   :  { %v715_v55 = vadd.f32 %v866_v54, %v830_v52 }
 0x2a0   :  { %v718_v56 = vmax.f32 %v715_v55, 0.0 }
 0x2a2   :  { %917 = vmatmul.mubr.f32.vlgmr.msra.gmra.mrb[4].mxu1 %v718_v56 }
 0x375   :  { %v808_v58 = vpop.f32.mrb[4].mxu1 }
 0x376   :  { %v809_v59 = vadd.f32 %v831_v57, %v808_v58  ;;  %v918_v60 = vpop.f32.mrb[5].mxu1 }
 0x378   :  { %812 = vst [vmem:[#allocation10] sm:$0xff] %v809_v59 }
 0x379   :  { %1318 = shalt.err (!%p1315_p8)
}
 0x37a   :  { %s1319_s11 = scalar_lea.hbm %s1467_s7, 128 }
 0x37b   :  { %p1320_p9 = scmp.ne.s32.totalorder %s1467_s7, %s1319_s11  ;;  %p1323_p10 = scmp.lt.u32.totalorder %s1319_s11, %s1467_s7 }
 0x37d   :  { %p1325_p11 = pnand %p1323_p10, %p1320_p9 }
 0x37f   :  { %1328 = shalt.err (!%p1325_p11)
}
 0x380   :  { %822 = dma.vmem_to_hbm [thread:$0]  %s820_s8, 128, %s1467_s7, [#allocation4]  }
 0x381   :  { %1335 = dma.done.wait [#allocation4], 128  }
 0x382   :  { %1336 = vsyncadd [#allocation4], 4294967168 }
 0x383   :  { %826 = vsyncpa [#allocation3], 1 }
 0x384   :  { %827 = vsyncpa [#allocation6], 1 }
 0x385   :  { %828 = vsyncpa [#allocation9], 1 }
 0x386   :  { %829 = vsyncpa [#allocation4], 1 }

</bundles_post_ra>
